<compile_context>
chip_gen: v6e
topology: v6e:2x2x1
jax: 0.10.0
libtpu: 0.0.40
codegen_flags: <defaults>
</compile_context>

<pallas_src>
import jax
import jax.numpy as jnp
from jax.experimental import pallas as pl
from jax.experimental.pallas import tpu as pltpu


def _swish_kernel(x_ref, o_ref):
    x = x_ref[...]
    o_ref[...] = (x * jax.nn.sigmoid(x)).astype(o_ref.dtype)


# Candidate lane-dense widths (all multiples of 128), widest first.
_WIDTHS = (4096, 2048, 1024, 512, 256, 128)


def _swish_2d(x2d, block_rows, width):
    """Run the swish kernel over a (rows, width) lane-dense slab."""
    rows = x2d.shape[0]
    grid = (pl.cdiv(rows, block_rows),)
    return pl.pallas_call(
        _swish_kernel,
        out_shape=jax.ShapeDtypeStruct(x2d.shape, x2d.dtype),
        grid_spec=pltpu.PrefetchScalarGridSpec(
            num_scalar_prefetch=0,
            grid=grid,
            in_specs=[pl.BlockSpec((block_rows, width), lambda i: (i, 0))],
            out_specs=pl.BlockSpec((block_rows, width), lambda i: (i, 0)),
        ),
        compiler_params=pltpu.CompilerParams(
            dimension_semantics=("parallel",),
        ),
    )(x2d)


def swish(x, *, target_block_bytes=2 * 1024 * 1024):
    """Elementwise swish over an arbitrarily-shaped array."""
    orig_shape = x.shape
    n = x.size
    if n == 0:
        return x

    itemsize = jnp.dtype(x.dtype).itemsize

    # Pick the widest lane-dense width that divides the flat size exactly
    # (no pad, no slice — just a metadata reshape).
    width = None
    for w in _WIDTHS:
        if n % w == 0:
            width = w
            break

    if width is not None:
        rows = n // width
        # ~target_block_bytes per block, rows rounded down to a multiple of 8
        # (sublane tiling); full-extent blocks are always legal for small rows.
        desired_rows = max(8, (target_block_bytes // (width * itemsize)) // 8 * 8)
        block_rows = rows if rows <= desired_rows else desired_rows
        x2d = x.reshape(rows, width)
        out2d = _swish_2d(x2d, block_rows, width)
        return out2d.reshape(orig_shape)

    # Ragged fallback (flat size not a multiple of 128): pad to 128 lanes.
    # Swish(0) = 0 and the tail is sliced off, so this is numerically safe.
    width = 128
    rows = pl.cdiv(n, width)
    n_pad = rows * width
    x_flat = jnp.ravel(x)
    x_flat = jnp.pad(x_flat, (0, n_pad - n))
    desired_rows = max(8, (target_block_bytes // (width * itemsize)) // 8 * 8)
    block_rows = rows if rows <= desired_rows else desired_rows
    out2d = _swish_2d(x_flat.reshape(rows, width), block_rows, width)
    return out2d.reshape(-1)[:n].reshape(orig_shape)


class Swish:
    """JAX/Pallas equivalent of pytorch_toolbelt Swish module (no params)."""

    def __init__(self, inplace=False):
        del inplace  # no-op, matches the PyTorch signature

    def __call__(self, input_tensor):
        return swish(input_tensor)


if __name__ == "__main__":
    key = jax.random.PRNGKey(0)
    x = jax.random.normal(key, (2, 4, 16, 16), dtype=jnp.float32)

    mod = Swish()
    y = mod(x)
    y = jax.block_until_ready(y)

    # Reference check against plain JAX swish.
    ref = x * jax.nn.sigmoid(x)
    assert y.shape == x.shape and y.dtype == x.dtype
    assert jnp.allclose(y, ref, atol=1e-6, rtol=1e-6)

    print("KERNEL_OK")
</pallas_src>

<mosaic_0001>
module attributes {stable_mosaic.version = 11 : i64} {
  func.func @_swish_kernel(%arg0: i32, %arg1: memref<1x2048xf32, #tpu.memory_space<vmem>>, %arg2: memref<1x2048xf32, #tpu.memory_space<vmem>>) attributes {dimension_semantics = [#tpu.dimension_semantics<parallel>], iteration_bounds = array<i64: 1>, scalar_prefetch = 0 : i64, scratch_operands = 0 : i64, tpu.core_type = #tpu.core_type<tc>, window_params = [{transform_indices = @transform_0, window_bounds = array<i64: 1, 2048>}, {transform_indices = @transform_1, window_bounds = array<i64: 1, 2048>}]} {
    %c0 = arith.constant 0 : index
    %c0_0 = arith.constant 0 : index
    %0 = vector.load %arg1[%c0, %c0_0] : memref<1x2048xf32, #tpu.memory_space<vmem>>, vector<1x2048xf32>
    %1 = arith.negf %0 : vector<1x2048xf32>
    %2 = math.exp %1 : vector<1x2048xf32>
    %cst = arith.constant 1.000000e+00 : f32
    %3 = vector.broadcast %cst : f32 to vector<1x2048xf32>
    %4 = arith.addf %3, %2 : vector<1x2048xf32>
    %5 = arith.divf %3, %4 : vector<1x2048xf32>
    %6 = arith.mulf %0, %5 : vector<1x2048xf32>
    %c0_1 = arith.constant 0 : index
    %c0_2 = arith.constant 0 : index
    %7 = vector.load %arg2[%c0_1, %c0_2] : memref<1x2048xf32, #tpu.memory_space<vmem>>, vector<1x2048xf32>
    tpu.vector_store %arg2[%c0_1, %c0_2], %6 {strides = array<i32>} : memref<1x2048xf32, #tpu.memory_space<vmem>>, vector<1x2048xf32>,
    return
  }
  func.func @transform_0(%arg0: i32) -> (i32, i32) {
    %c0_i32 = arith.constant 0 : i32
    %c0_i32_0 = arith.constant 0 : i32
    return %arg0, %c0_i32 : i32, i32
  }
  func.func @transform_1(%arg0: i32) -> (i32, i32) {
    %c0_i32 = arith.constant 0 : i32
    %c0_i32_0 = arith.constant 0 : i32
    return %arg0, %c0_i32 : i32, i32
  }
}

</mosaic_0001>

<bundles_post_ra>
// kernel: tpu_custom_call.1
= control target key start
LH: loop header
LB: loop body
LE: loop exit
PB: predicated region body
PF: predicated region fallthrough
CT: control target
= control target key end

     0   :  { %6 = vsyncpa [#allocation3], 0  ;;  %s128_s0 = inlined_call_operand.hbm [shape: f32[1,2048], index: 0, kind: input, shape index: {}]   ;;  %s129_s1 = inlined_call_operand.hbm [shape: f32[1,2048], index: 1, kind: output, shape index: {}]  }
   0x1   :  { %7 = vsyncpa [#allocation4], 0  ;;  %s110_s6 = smov [#allocation2]  }
   0x2   :  { %s14_s7 = sshll.u32 %s110_s6, 4  ;;  %s15_s7 = int_to_ptr.vmem [resolvable:$true] %s14_s7 }
   0x3   :  { %s74_s8 = scalar_lea.vmem %s15_s7, 256  ;;  %p79_p1 = scmp.lt.s32.totalorder %s15_s7, %s15_s7 }
   0x4   :  { %p75_p0 = scmp.ne.s32.totalorder %s15_s7, %s74_s8  ;;  %p80_p2 = scmp.lt.s32.totalorder %s74_s8, %s74_s8 }
   0x6   :  { %p81_p3 = por %p80_p2, %p79_p1 }
   0x8   :  { %p82_p4 = pnand %p81_p3, %p75_p0 }
   0xa   :  { %85 = shalt.err (!%p82_p4)
}
   0xb   :  { %17 = dma.hbm_to_vmem [thread:$0]  %s128_s0, 256, %s15_s7, [#allocation3]  }
   0xc   :  { %106 = dma.done.wait [#allocation3], 256  }
   0xd   :  { %107 = vsyncadd [#allocation3], 4294967040  ;;  %v21_v0 = vld [vmem:[#allocation2] sm:$0xff]  ;;  %v22_v1 = vld [vmem:[#allocation2 + $0x8] sm:$0xff]  ;;  %s111_s11 = smov [#allocation5]  }
   0xe   :  { %v54_v2 = vmul.f32 -1.442695, %v21_v0  ;;  %v55_v3 = vmul.f32 -1.442695, %v22_v1  ;;  %s45_s12 = sshll.u32 %s111_s11, 4  ;;  %s46_s12 = int_to_ptr.vmem [resolvable:$true] %s45_s12 }
   0xf   :  { %s86_s0 = scalar_lea.vmem %s46_s12, 256  ;;  %p91_p6 = scmp.lt.s32.totalorder %s46_s12, %s46_s12 }
  0x10   :  { %58 = vpow2.f32 %v54_v2  ;;  %p87_p5 = scmp.ne.s32.totalorder %s46_s12, %s86_s0  ;;  %p92_p7 = scmp.lt.s32.totalorder %s86_s0, %s86_s0 }
  0x11   :  { %60 = vpow2.f32 %v55_v3 }
  0x12   :  { %p93_p8 = por %p92_p7, %p91_p6 }
  0x14   :  { %p94_p9 = pnand %p93_p8, %p87_p5 }
  0x1d   :  { %v59_v4 = vpop.eup %58 }
  0x1e   :  { %v61_v5 = vpop.eup %60  ;;  %v29_v6 = vadd.f32 1.0, %v59_v4 }
  0x1f   :  { %v30_v7 = vadd.f32 1.0, %v61_v5 }
  0x20   :  { %62 = vrcp.f32 %v29_v6 }
  0x21   :  { %64 = vrcp.f32 %v30_v7 }
  0x2d   :  { %v63_v8 = vpop.eup %62 }
  0x2e   :  { %v65_v9 = vpop.eup %64  ;;  %v35_v10 = vmul.f32 %v63_v8, %v21_v0 }
  0x2f   :  { %v36_v11 = vmul.f32 %v65_v9, %v22_v1 }
  0x30   :  { %37 = vst [vmem:[#allocation5] sm:$0xff] %v35_v10 }
  0x31   :  { %38 = vst [vmem:[#allocation5 + $0x8] sm:$0xff] %v36_v11 }
  0x32   :  { %97 = shalt.err (!%p94_p9)
}
  0x33   :  { %48 = dma.vmem_to_hbm [thread:$0]  %s46_s12, 256, %s129_s1, [#allocation4]  }
  0x34   :  { %108 = dma.done.wait [#allocation4], 256  }
  0x35   :  { %109 = vsyncadd [#allocation4], 4294967040 }
  0x36   :  { %52 = vsyncpa [#allocation3], 1 }
  0x37   :  { %53 = vsyncpa [#allocation4], 1 }

</bundles_post_ra>
